<compile_context>
chip_gen: v7x
topology: tpu7x:2x2x1
jax: 0.10.0
libtpu: 0.0.40
codegen_flags: <defaults>
</compile_context>

<pallas_src>
import jax
import jax.numpy as jnp
from jax.experimental import pallas as pl
from jax.experimental.pallas import tpu as pltpu


def _pixelwise_kernel(param_ref, out_ref):
    # Identity passthrough of the stored parameter (single whole-array tile).
    out_ref[...] = param_ref[...]


def _pixelwise_forward_impl(param, x):
    """Pallas equivalent of Pixelwise.forward: ignores `x`, returns the stored
    parameter.

    NOTE: the fastest possible implementation is simply `return param`
    (zero ops).  The pallas_call below exists because a kernel path is
    required; it is a single un-gridded VMEM copy, which is pure launch
    overhead at this size.
    """
    del x  # forward ignores its input, exactly like the PyTorch module
    itemsize = jnp.dtype(param.dtype).itemsize
    return pl.pallas_call(
        _pixelwise_kernel,
        out_shape=jax.ShapeDtypeStruct(param.shape, param.dtype),
        # No grid: one kernel invocation over the full (tiny) array — no
        # software pipeline, no double-buffering.
        in_specs=[pl.BlockSpec(memory_space=pltpu.MemorySpace.VMEM)],
        out_specs=pl.BlockSpec(memory_space=pltpu.MemorySpace.VMEM),
        # Honest scheduler hint: one read + one write of the parameter.
        cost_estimate=pl.CostEstimate(
            flops=0,
            transcendentals=0,
            bytes_accessed=2 * int(param.size) * itemsize,
        ),
    )(param)


# Compile once, dispatch as a cached executable thereafter.
pixelwise_forward = jax.jit(_pixelwise_forward_impl)


class PixelwiseJax:
    """Mirror of the PyTorch Pixelwise module: holds a (10, 10) tensor."""

    def __init__(self, key):
        # torch.randn(10, 10) analogue, deterministic in-script.
        self.x = jax.random.normal(key, (10, 10), dtype=jnp.float32)

    def __call__(self, x):
        return pixelwise_forward(self.x, x)


if __name__ == "__main__":
    key = jax.random.PRNGKey(0)
    k_param, k_input = jax.random.split(key)

    module = PixelwiseJax(k_param)

    # Example input — ignored by the forward pass, just like in PyTorch.
    x_in = jax.random.normal(k_input, (10, 10), dtype=jnp.float32)

    out = module(x_in)
    out = jax.block_until_ready(out)

    # Sanity check: output must equal the stored parameter exactly, and the
    # parameter itself must remain readable (no donation / aliasing).
    assert out.shape == (10, 10)
    assert out.dtype == jnp.float32
    assert bool(jnp.all(out == module.x))

    print("KERNEL_OK")
</pallas_src>

<mosaic_0001>
module attributes {stable_mosaic.version = 11 : i64} {
  func.func @_pixelwise_kernel(%arg0: memref<10x10xf32, #tpu.memory_space<vmem>>, %arg1: memref<10x10xf32, #tpu.memory_space<vmem>>) attributes {dimension_semantics = [], scalar_prefetch = 0 : i64, scratch_operands = 0 : i64, tpu.core_type = #tpu.core_type<tc>} {
    %c0 = arith.constant 0 : index
    %c0_0 = arith.constant 0 : index
    %0 = vector.load %arg0[%c0, %c0_0] : memref<10x10xf32, #tpu.memory_space<vmem>>, vector<10x10xf32>
    %c0_1 = arith.constant 0 : index
    %c0_2 = arith.constant 0 : index
    %1 = vector.load %arg1[%c0_1, %c0_2] : memref<10x10xf32, #tpu.memory_space<vmem>>, vector<10x10xf32>
    tpu.vector_store %arg1[%c0_1, %c0_2], %0 {strides = array<i32>} : memref<10x10xf32, #tpu.memory_space<vmem>>, vector<10x10xf32>,
    return
  }
}

</mosaic_0001>

<bundles_post_ra>
// kernel: _pixelwise_forward_impl.1
= control target key start
LH: loop header
LB: loop body
LE: loop exit
PB: predicated region body
PF: predicated region fallthrough
CT: control target
= control target key end

     0   :  { %6 = vsyncpa [#allocation3], 0  ;;  %s136_s0 = inlined_call_operand.hbm [shape: f32[10,10], index: 0, kind: input, shape index: {}]   ;;  %s137_s1 = inlined_call_operand.hbm [shape: f32[10,10], index: 1, kind: output, shape index: {}]  }
   0x1   :  { %7 = vsyncpa [#allocation4], 0  ;;  %s98_s6 = smov [#allocation2]   ;;  %s50_s10 = scalar_lea.hbm %s136_s0, 256 }
   0x2   :  { %s13_s7 = sshll.u32 %s98_s6, 4  ;;  %p51_p0 = scmp.ne.s32.totalorder %s136_s0, %s50_s10  ;;  %s14_s7 = int_to_ptr.vmem [resolvable:$true] %s13_s7 }
   0x3   :  { %p54_p1 = scmp.lt.u32.totalorder %s50_s10, %s136_s0 }
   0x5   :  { %p56_p2 = pnand %p54_p1, %p51_p0 }
   0x7   :  { %59 = shalt.err (!%p56_p2)
}
   0x8   :  { %s60_s15 = scalar_lea.vmem %s14_s7, 256  ;;  %p65_p4 = scmp.lt.s32.totalorder %s14_s7, %s14_s7 }
   0x9   :  { %p61_p3 = scmp.ne.s32.totalorder %s14_s7, %s60_s15  ;;  %p66_p5 = scmp.lt.s32.totalorder %s60_s15, %s60_s15 }
   0xb   :  { %p67_p6 = por %p66_p5, %p65_p4 }
   0xd   :  { %p68_p7 = pnand %p67_p6, %p61_p3 }
   0xf   :  { %71 = shalt.err (!%p68_p7)
}
  0x10   :  { %s99_s16 = smov 128   ;;  %s100_s17 = smov 8  }
  0x11   :  { %19 = dma.hbm_to_vmem [thread:$0]  %s136_s0, 256, %s14_s7, [#allocation3], %s99_s16, %s99_s16, %s100_s17  }
  0x12   :  { %94 = dma.done.wait [#allocation3], 256  }
  0x13   :  { %95 = vsyncadd [#allocation3], 4294967040  ;;  %s101_s20 = smov [#allocation5]   ;;  %vm25_vm0 = vcmask 80896   ;;  %vm27_vm1 = vcmask 74752   ;;  %v23_v0 = vld [vmem:[#allocation2] sm:$0xff] }
  0x14   :  { %s34_s21 = sshll.u32 %s101_s20, 4  ;;  %v24_v1 = vld [vmem:[#allocation2 + $0x8] sm:$0x3]  ;;  %26 = vst.msk [vmem:[#allocation5] sm:$0xff] %vm25_vm0, %v23_v0  ;;  %s35_s21 = int_to_ptr.vmem [resolvable:$true] %s34_s21 }
  0x15   :  { %28 = vst.msk [vmem:[#allocation5 + $0x8] sm:$0x3] %vm27_vm1, %v24_v1  ;;  %s72_s22 = scalar_lea.vmem %s35_s21, 256  ;;  %p77_p9 = scmp.lt.s32.totalorder %s35_s21, %s35_s21 }
  0x16   :  { %p73_p8 = scmp.ne.s32.totalorder %s35_s21, %s72_s22  ;;  %p78_p10 = scmp.lt.s32.totalorder %s72_s22, %s72_s22 }
  0x18   :  { %p79_p11 = por %p78_p10, %p77_p9 }
  0x1a   :  { %p80_p12 = pnand %p79_p11, %p73_p8 }
  0x1c   :  { %83 = shalt.err (!%p80_p12)
}
  0x1d   :  { %s84_s24 = scalar_lea.hbm %s137_s1, 256 }
  0x1e   :  { %p85_p13 = scmp.ne.s32.totalorder %s137_s1, %s84_s24  ;;  %p88_p0 = scmp.lt.u32.totalorder %s84_s24, %s137_s1 }
  0x20   :  { %p90_p1 = pnand %p88_p0, %p85_p13 }
  0x22   :  { %93 = shalt.err (!%p90_p1)
}
  0x23   :  { %40 = dma.vmem_to_hbm [thread:$0]  %s35_s21, 256, %s137_s1, [#allocation4], %s99_s16, %s99_s16, %s100_s17  }
  0x24   :  { %96 = dma.done.wait [#allocation4], 256  }
  0x25   :  { %97 = vsyncadd [#allocation4], 4294967040 }
  0x26   :  { %44 = vsyncpa [#allocation3], 1 }
  0x27   :  { %45 = vsyncpa [#allocation4], 1 }

</bundles_post_ra>
